<compile_context>
chip_gen: v6e
topology: v6e:2x2x1
jax: 0.10.0
libtpu: 0.0.40
codegen_flags: <defaults>
</compile_context>

<pallas_src>
import functools

import jax
import jax.numpy as jnp
from jax import lax
from jax.experimental import pallas as pl
from jax.experimental.pallas import tpu as pltpu


def _dice_kernel(pred_ref, ref_ref, out_ref, acc_inter, acc_card, *,
                 n_cls, n_total, eps, micro):
    b = pl.program_id(0)
    i = pl.program_id(1)

    @pl.when(jnp.logical_and(b == 0, i == 0))
    def _():
        acc_inter[...] = jnp.zeros_like(acc_inter)
        acc_card[...] = jnp.zeros_like(acc_card)

    x = pred_ref[...]                                   # (C, TN) logits, native dtype
    C, TN = x.shape
    r = ref_ref[...]                                    # (1, TN) int32 labels

    # argmax over the class axis directly on logits (softmax is monotone, so
    # argmax(softmax(x)) == argmax(x)); first-occurrence tie-break like torch/jnp.
    m = jnp.max(x, axis=0, keepdims=True)               # (1, TN)
    cls_iota = lax.broadcasted_iota(jnp.int32, (C, TN), 0)
    pred_cls = jnp.min(jnp.where(x == m, cls_iota, n_cls),
                       axis=0, keepdims=True)           # (1, TN) int32

    # one-hot algebra over classes 1..nCls-1 collapsed analytically:
    #   intersection_v = [pred_cls == ref and ref >= 1]
    #   cardinality_v  = [pred_cls >= 1] + [ref >= 1]
    inter = jnp.logical_and(pred_cls == r, r >= 1).astype(jnp.float32)   # (1, TN)

    # lane-wide elementwise accumulation (VPU); cross-lane reduce deferred to end.
    acc_inter[...] += inter
    if not micro:
        card = (pred_cls >= 1).astype(jnp.float32) + (r >= 1).astype(jnp.float32)
        acc_card[...] += card

    @pl.when(jnp.logical_and(b == pl.num_programs(0) - 1,
                             i == pl.num_programs(1) - 1))
    def _():
        inter_sum = jnp.sum(acc_inter[...], axis=(0, 1), keepdims=True)  # (1, 1)
        if micro:
            # per-voxel: inter==1 -> card==2 -> loss = 1 - 2/(2+eps);
            #            inter==0 -> loss = 1.  Mean over voxels:
            out_ref[...] = 1.0 - (2.0 / (2.0 + eps)) * inter_sum / n_total
        else:
            card_sum = jnp.sum(acc_card[...], axis=(0, 1), keepdims=True)
            out_ref[...] = 1.0 - 2.0 * inter_sum / (card_sum + eps)


def _pick_tile(dhw, max_tile=8192):
    """Largest multiple of 128 that divides dhw and is <= max_tile."""
    assert dhw % 128 == 0, "D*H*W must be a multiple of 128"
    t = (min(dhw, max_tile) // 128) * 128
    while dhw % t != 0:
        t -= 128
    return t


def dice_loss_pallas(pred, ref, n_cls, average, eps=1e-8, tile_n=None):
    B, C, D, H, W = pred.shape
    assert C == n_cls
    DHW = D * H * W
    if tile_n is None:
        tile_n = _pick_tile(DHW)
    assert DHW % tile_n == 0 and tile_n % 128 == 0

    # Free reshapes only (contiguous NCDHW) -- no transpose / extra HBM pass.
    pred2 = pred.reshape(B, C, DHW)
    ref2 = ref.reshape(B, 1, DHW).astype(jnp.int32)

    micro = (average == "micro")
    kernel = functools.partial(
        _dice_kernel, n_cls=n_cls, n_total=float(B * DHW),
        eps=float(eps), micro=micro,
    )

    out = pl.pallas_call(
        kernel,
        out_shape=jax.ShapeDtypeStruct((1, 1), jnp.float32),
        grid_spec=pltpu.PrefetchScalarGridSpec(
            num_scalar_prefetch=0,
            grid=(B, DHW // tile_n),
            in_specs=[
                pl.BlockSpec((pl.Squeezed(), C, tile_n), lambda b, i: (b, 0, i)),
                pl.BlockSpec((pl.Squeezed(), 1, tile_n), lambda b, i: (b, 0, i)),
            ],
            out_specs=pl.BlockSpec((1, 1), lambda b, i: (0, 0)),
            scratch_shapes=[
                pltpu.VMEM((1, tile_n), jnp.float32),   # intersection partials
                pltpu.VMEM((1, tile_n), jnp.float32),   # cardinality partials
            ],
        ),
        compiler_params=pltpu.CompilerParams(
            dimension_semantics=("arbitrary", "arbitrary"),
        ),
    )(pred2, ref2)
    return out[0, 0]


def dice_loss_ref(pred, ref, n_cls, average, eps=1e-8):
    """Pure-JAX reference mirroring the PyTorch code."""
    soft = jax.nn.softmax(pred, axis=1)
    cls = jnp.argmax(soft, axis=1)
    p1 = jax.nn.one_hot(cls, n_cls, axis=1, dtype=jnp.float32)
    r1 = jax.nn.one_hot(ref, n_cls, axis=1, dtype=jnp.float32)
    if average == "micro":
        inter = jnp.sum(p1[:, 1:] * r1[:, 1:], axis=1)
        card = jnp.sum(p1[:, 1:] + r1[:, 1:], axis=1)
    else:
        inter = jnp.sum(p1[:, 1:] * r1[:, 1:])
        card = jnp.sum(p1[:, 1:] + r1[:, 1:])
    score = 2.0 * inter / (card + eps)
    return jnp.mean(1.0 - score)


class DiceLoss:
    """Stateless module matching the PyTorch DiceLoss (no parameters)."""

    def __init__(self, nCls, average, eps=1e-8):
        self.nCls = nCls
        self.average = average
        self.eps = eps

    def __call__(self, pred, ref):
        return dice_loss_pallas(pred, ref, self.nCls, self.average, self.eps)


if __name__ == "__main__":
    key = jax.random.PRNGKey(0)
    k_pred, k_ref = jax.random.split(key)

    B, C, D, H, W = 2, 4, 4, 8, 32          # DHW = 1024 (multiple of 128)
    pred = jax.random.normal(k_pred, (B, C, D, H, W), dtype=jnp.float32)
    ref = jax.random.randint(k_ref, (B, D, H, W), 0, C, dtype=jnp.int32)

    ok = True
    for avg in ("micro", "macro"):
        loss_ref = jax.block_until_ready(dice_loss_ref(pred, ref, C, avg))
        # default large tile (single-tile path) and a smaller tile (multi-tile
        # accumulation path) must both match the reference.
        for tn in (None, 256):
            loss = jax.block_until_ready(
                dice_loss_pallas(pred, ref, C, avg, tile_n=tn))
            if not jnp.allclose(loss, loss_ref, rtol=1e-5, atol=1e-5):
                ok = False
                print(f"MISMATCH ({avg}, tile={tn}): pallas={loss} ref={loss_ref}")
        # module wrapper (default tile)
        loss_mod = jax.block_until_ready(DiceLoss(C, avg)(pred, ref))
        if not jnp.allclose(loss_mod, loss_ref, rtol=1e-5, atol=1e-5):
            ok = False
            print(f"MISMATCH module ({avg}): pallas={loss_mod} ref={loss_ref}")

    if ok:
        print("KERNEL_OK")
</pallas_src>

<mosaic_0001>
module attributes {stable_mosaic.version = 11 : i64} {
  func.func @_dice_kernel(%arg0: i32, %arg1: i32, %arg2: memref<1x4x1024xf32, #tpu.memory_space<vmem>>, %arg3: memref<1x1x1024xi32, #tpu.memory_space<vmem>>, %arg4: memref<1x1xf32, #tpu.memory_space<vmem>>, %arg5: memref<1x1024xf32, #tpu.memory_space<vmem>>, %arg6: memref<1x1024xf32, #tpu.memory_space<vmem>>) attributes {dimension_semantics = [#tpu.dimension_semantics<arbitrary>, #tpu.dimension_semantics<arbitrary>], iteration_bounds = array<i64: 2, 1>, scalar_prefetch = 0 : i64, scratch_operands = 2 : i64, tpu.core_type = #tpu.core_type<tc>, window_params = [{transform_indices = @transform_0, window_bounds = array<i64: 1, 4, 1024>}, {transform_indices = @transform_1, window_bounds = array<i64: 1, 1, 1024>}, {pipeline_mode = #tpu.pipeline_mode<synchronous>, transform_indices = @transform_2, window_bounds = array<i64: 1, 1>}]} {
    %c0_i32 = arith.constant 0 : i32
    %0 = arith.cmpi eq, %arg0, %c0_i32 : i32
    %c0_i32_0 = arith.constant 0 : i32
    %1 = arith.cmpi eq, %arg1, %c0_i32_0 : i32
    %2 = arith.andi %0, %1 : i1
    %3 = arith.extui %2 : i1 to i32
    %c0_i32_1 = arith.constant 0 : i32
    %4 = arith.cmpi ne, %3, %c0_i32_1 : i32
    scf.if %4 {
      %cst_15 = arith.constant 0.000000e+00 : f32
      %32 = vector.broadcast %cst_15 : f32 to vector<1x1024xf32>
      %c0_16 = arith.constant 0 : index
      %c0_17 = arith.constant 0 : index
      %33 = vector.load %arg5[%c0_16, %c0_17] : memref<1x1024xf32, #tpu.memory_space<vmem>>, vector<1x1024xf32>
      tpu.vector_store %arg5[%c0_16, %c0_17], %32 {strides = array<i32>} : memref<1x1024xf32, #tpu.memory_space<vmem>>, vector<1x1024xf32>,
      %cst_18 = arith.constant 0.000000e+00 : f32
      %34 = vector.broadcast %cst_18 : f32 to vector<1x1024xf32>
      %c0_19 = arith.constant 0 : index
      %c0_20 = arith.constant 0 : index
      %35 = vector.load %arg6[%c0_19, %c0_20] : memref<1x1024xf32, #tpu.memory_space<vmem>>, vector<1x1024xf32>
      tpu.vector_store %arg6[%c0_19, %c0_20], %34 {strides = array<i32>} : memref<1x1024xf32, #tpu.memory_space<vmem>>, vector<1x1024xf32>,
    } else {
    }
    %c0 = arith.constant 0 : index
    %c0_2 = arith.constant 0 : index
    %c0_3 = arith.constant 0 : index
    %5 = vector.load %arg2[%c0, %c0_2, %c0_3] : memref<1x4x1024xf32, #tpu.memory_space<vmem>>, vector<1x4x1024xf32>
    %6 = vector.shape_cast %5 : vector<1x4x1024xf32> to vector<4x1024xf32>
    %c0_4 = arith.constant 0 : index
    %c0_5 = arith.constant 0 : index
    %c0_6 = arith.constant 0 : index
    %7 = vector.load %arg3[%c0_4, %c0_5, %c0_6] : memref<1x1x1024xi32, #tpu.memory_space<vmem>>, vector<1x1x1024xi32>
    %8 = vector.shape_cast %7 : vector<1x1x1024xi32> to vector<1x1024xi32>
    %cst = arith.constant dense<0xFF800000> : vector<1024xf32>
    %9 = vector.multi_reduction <maximumf>, %6, %cst [0] : vector<4x1024xf32> to vector<1024xf32>
    %10 = vector.shape_cast %9 : vector<1024xf32> to vector<1x1024xf32>
    %11 = tpu.iota {dimensions = array<i32: 0>} : vector<4x1024xi32>
    %12 = vector.broadcast %10 : vector<1x1024xf32> to vector<4x1024xf32>
    %13 = arith.cmpf oeq, %6, %12 : vector<4x1024xf32>
    %c4_i32 = arith.constant 4 : i32
    %14 = vector.broadcast %c4_i32 : i32 to vector<4x1024xi32>
    %15 = arith.select %13, %11, %14 : vector<4x1024xi1>, vector<4x1024xi32>
    %cst_7 = arith.constant dense<2147483647> : vector<1024xi32>
    %16 = vector.multi_reduction <minsi>, %15, %cst_7 [0] : vector<4x1024xi32> to vector<1024xi32>
    %17 = vector.shape_cast %16 : vector<1024xi32> to vector<1x1024xi32>
    %18 = arith.cmpi eq, %17, %8 : vector<1x1024xi32>
    %c1_i32 = arith.constant 1 : i32
    %19 = vector.broadcast %c1_i32 : i32 to vector<1x1024xi32>
    %20 = arith.cmpi sge, %8, %19 : vector<1x1024xi32>
    %21 = arith.andi %18, %20 : vector<1x1024xi1>
    %22 = arith.extui %21 : vector<1x1024xi1> to vector<1x1024xi32>
    %23 = arith.sitofp %22 : vector<1x1024xi32> to vector<1x1024xf32>
    %c0_8 = arith.constant 0 : index
    %c0_9 = arith.constant 0 : index
    %24 = vector.load %arg5[%c0_8, %c0_9] : memref<1x1024xf32, #tpu.memory_space<vmem>>, vector<1x1024xf32>
    %25 = arith.addf %24, %23 : vector<1x1024xf32>
    %c0_10 = arith.constant 0 : index
    %c0_11 = arith.constant 0 : index
    %26 = vector.load %arg5[%c0_10, %c0_11] : memref<1x1024xf32, #tpu.memory_space<vmem>>, vector<1x1024xf32>
    tpu.vector_store %arg5[%c0_10, %c0_11], %25 {strides = array<i32>} : memref<1x1024xf32, #tpu.memory_space<vmem>>, vector<1x1024xf32>,
    %c1_i32_12 = arith.constant 1 : i32
    %27 = arith.cmpi eq, %arg0, %c1_i32_12 : i32
    %c0_i32_13 = arith.constant 0 : i32
    %28 = arith.cmpi eq, %arg1, %c0_i32_13 : i32
    %29 = arith.andi %27, %28 : i1
    %30 = arith.extui %29 : i1 to i32
    %c0_i32_14 = arith.constant 0 : i32
    %31 = arith.cmpi ne, %30, %c0_i32_14 : i32
    scf.if %31 {
      %c0_15 = arith.constant 0 : index
      %c0_16 = arith.constant 0 : index
      %32 = vector.load %arg5[%c0_15, %c0_16] : memref<1x1024xf32, #tpu.memory_space<vmem>>, vector<1x1024xf32>
      %33 = vector.shape_cast %32 : vector<1x1024xf32> to vector<1x1x1024xf32>
      %cst_17 = arith.constant dense<0.000000e+00> : vector<1xf32>
      %34 = vector.multi_reduction <add>, %33, %cst_17 [1, 2] : vector<1x1x1024xf32> to vector<1xf32>
      %35 = vector.shape_cast %34 : vector<1xf32> to vector<1x1x1xf32>
      %36 = vector.extract %35[0, 0, 0] : f32 from vector<1x1x1xf32>
      %37 = vector.broadcast %36 : f32 to vector<1x1xf32>
      %cst_18 = arith.constant 1.000000e+00 : f32
      %38 = vector.broadcast %cst_18 : f32 to vector<1x1xf32>
      %39 = arith.mulf %38, %37 : vector<1x1xf32>
      %cst_19 = arith.constant 2.048000e+03 : f32
      %40 = vector.broadcast %cst_19 : f32 to vector<1x1xf32>
      %41 = arith.divf %39, %40 : vector<1x1xf32>
      %cst_20 = arith.constant 1.000000e+00 : f32
      %42 = vector.broadcast %cst_20 : f32 to vector<1x1xf32>
      %43 = arith.subf %42, %41 : vector<1x1xf32>
      %c0_21 = arith.constant 0 : index
      %c0_22 = arith.constant 0 : index
      %44 = vector.load %arg4[%c0_21, %c0_22] : memref<1x1xf32, #tpu.memory_space<vmem>>, vector<1x1xf32>
      tpu.vector_store %arg4[%c0_21, %c0_22], %43 {strides = array<i32>} : memref<1x1xf32, #tpu.memory_space<vmem>>, vector<1x1xf32>,
    } else {
    }
    return
  }
  func.func @transform_0(%arg0: i32, %arg1: i32) -> (i32, i32, i32) {
    %c0_i32 = arith.constant 0 : i32
    %c0_i32_0 = arith.constant 0 : i32
    return %arg0, %c0_i32, %arg1 : i32, i32, i32
  }
  func.func @transform_1(%arg0: i32, %arg1: i32) -> (i32, i32, i32) {
    %c0_i32 = arith.constant 0 : i32
    %c0_i32_0 = arith.constant 0 : i32
    return %arg0, %c0_i32, %arg1 : i32, i32, i32
  }
  func.func @transform_2(%arg0: i32, %arg1: i32) -> (i32, i32) {
    %c0_i32 = arith.constant 0 : i32
    %c0_i32_0 = arith.constant 0 : i32
    %c0_i32_1 = arith.constant 0 : i32
    return %c0_i32, %c0_i32_0 : i32, i32
  }
}

</mosaic_0001>

<bundles_post_ra>
// kernel: tpu_custom_call.1
= control target key start
LH: loop header
LB: loop body
LE: loop exit
PB: predicated region body
PF: predicated region fallthrough
CT: control target
= control target key end

     0   :  { %7 = vsyncpa [#allocation5], 0  ;;  %s1380_s0 = inlined_call_operand.hbm [shape: f32[2,4,1024], index: 0, kind: input, shape index: {}]   ;;  %s1381_s1 = inlined_call_operand.hbm [shape: s32[2,1,1024], index: 1, kind: input, shape index: {}]   ;;  %s1382_s2 = inlined_call_operand.hbm [shape: f32[1,1], index: 2, kind: output, shape index: {}]  }
   0x1   :  { %9 = vsyncpa [#allocation5 + $0x1], 0 }
   0x2   :  { %10 = vsyncpa [#allocation8], 0 }
   0x3   :  { %12 = vsyncpa [#allocation8 + $0x1], 0 }
   0x4   :  { %13 = vsyncpa [#allocation6], 0  ;;  %s1018_s9 = smov 0   ;;  %s1020_s10 = smov 0  }
   0x5   :  { %s1022_s11 = smov 0   ;;  %s1024_s12 = smov 0  }
   0x6   :  { %s1026_s13 = smov 0   ;;  %s1028_s14 = smov 0  }
   0x7 LB: > { %s747_s15 = sadd.s32 4294967295, %s993_s14   ;;  %s31_s16 = sadd.s32 1, %s989_s13  ;;  %s993_s14 = sphi %s1028_s14, %s19_s14   ;;  %s989_s13 = sphi %s1026_s13, %s1422_s13   ;;  %s985_s12 = sphi %s1024_s12, %s1421_s12   ;;  %s981_s11 = sphi %s1022_s11, %s1420_s11   ;;  %s977_s10 = sphi %s1020_s10, %s1419_s10   ;;  %s973_s9 = sphi %s1018_s9, %s1418_s9  }
   0x8   : > { %p33_p0 = scmp.ge.s32.totalorder %s31_s16, 2  ;;  %s40_s17 = sadd.s32 1, %s981_s11 }
   0x9   : > { %p47_p1 = scmp.ne.s32.totalorder %s981_s11, %s977_s10  ;;  %p48_p2 = scmp.eq.s32.totalorder %s993_s14, 0 }
   0xa   : > { %s1424_s16 = smov (%p33_p0, %s31_s16), 0  ;;  %p53_p4 = scmp.ne.s32.totalorder %s977_s10, %s973_s9 }
   0xb   : > { %p1054_p3 = por %p48_p2, %p47_p1  ;;  %s35_s19 = ssub.s32 %s989_s13, %s1424_s16 }
   0xc   : > { %p54_p5 = scmp.eq.s32.totalorder %s747_s15, 0  ;;  %p38_p6 = scmp.eq.s32.totalorder %s35_s19, 0 }
   0xd   : > { %p794_p8 = scmp.lt.s32.totalorder %s993_s14, 2  ;;  %s1072_s22 = sand.u32 1, %s981_s11  }
   0xe   : > { %p1063_p7 = por %p54_p5, %p53_p4  ;;  %s773_s23 = sshll.u32 %s989_s13, 9 }
   0xf   : > { %s1069_s21 = scalar_select %p38_p6, %s981_s11, %s40_s17  }
  0x10   : > { %s750_s24 = sshll.u32 %s1072_s22, 5  ;;  %s138_s27 = scalar_lea.hbm %s1380_s0, %s773_s23 }
  0x11   : > { %s130_s28 = scalar_lea.vmem [#allocation4], %s750_s24  ;;  %p1081_p9 = pnand %p794_p8, %p1054_p3 }
  0x12   : > { %s140_s29 = sshll.u32 %s130_s28, 4  ;;  %p756_p10 = scmp.ge.s32.totalorder %s993_s14, 1  ;;  %s141_s29 = int_to_ptr.vmem [resolvable:$true] %s140_s29 }
  0x13   : > { %p166_p11 = scmp.lt.s32.totalorder %s993_s14, 3  ;;  %s127_s3 = scalar_lea.sflag [#allocation5], %s1072_s22 }
  0x14   : > { %p857_p12 = pneg %p1081_p9  ;;  %s868_s4 = scalar_lea.vmem %s141_s29, 512 }
  0x15   : > { %p869_p13 = scmp.ne.s32.totalorder %s141_s29, %s868_s4  ;;  %s995_s5 = smov [#allocation4]  }
  0x16   : > { %s873_s6 = sshll.u32 %s995_s5, 4  ;;  %s874_s6 = int_to_ptr.vmem [resolvable:$false] %s873_s6 }
  0x17   : > { %p871_p0 = pnand %p869_p13, %p857_p12  ;;  %s875_s7 = scalar_lea.vmem %s874_s6, 1024 }
  0x18   : > { %p876_p2 = scmp.lt.s32.totalorder %s141_s29, %s874_s6  ;;  %p877_p3 = scmp.lt.s32.totalorder %s875_s7, %s868_s4 }
  0x19   : > { %p872_p1 = pneg %p871_p0 }
  0x1a   : > { %p878_p4 = por %p877_p3, %p876_p2 }
  0x1c   : > { %p879_p5 = pnand %p878_p4, %p872_p1 }
  0x1e   : > { %882 = shalt.err (!%p879_p5)
}
  0x1f   : > { %790 = dma.hbm_to_vmem [thread:$0]  (!%p1081_p9), %s138_s27, 512, %s141_s29, %s127_s3  }
  0x20   : > { %p1099_p6 = pnand %p756_p10, %p166_p11  ;;  %s753_s9 = sshll.u32 %s1072_s22, 3 }
  0x21   : > { %s774_s17 = sshll.u32 %s989_s13, 7  ;;  %s151_s24 = scalar_lea.vmem [#allocation7], %s753_s9 }
  0x22   : > { %s159_s23 = scalar_lea.hbm %s1381_s1, %s774_s17  ;;  %s161_s25 = sshll.u32 %s151_s24, 4  ;;  %s162_s25 = int_to_ptr.vmem [resolvable:$true] %s161_s25 }
  0x23   : > { %s148_s26 = scalar_lea.sflag [#allocation8], %s1072_s22  ;;  %s896_s28 = scalar_lea.vmem %s162_s25, 128 }
  0x24   : > { %p897_p8 = scmp.ne.s32.totalorder %s162_s25, %s896_s28  ;;  %s996_s27 = smov [#allocation7]  }
  0x25   : > { %s901_s29 = sshll.u32 %s996_s27, 4  ;;  %s902_s29 = int_to_ptr.vmem [resolvable:$false] %s901_s29 }
  0x26   : > { %p899_p13 = pnand %p897_p8, %p857_p12  ;;  %s903_s3 = scalar_lea.vmem %s902_s29, 256 }
  0x27   : > { %p904_p10 = scmp.lt.s32.totalorder %s162_s25, %s902_s29  ;;  %p905_p11 = scmp.lt.s32.totalorder %s903_s3, %s896_s28 }
  0x28   : > { %p900_p0 = pneg %p899_p13 }
  0x29   : > { %p906_p1 = por %p905_p11, %p904_p10 }
  0x2b   : > { %p907_p2 = pnand %p906_p1, %p900_p0 }
  0x2d   : > { %910 = shalt.err (!%p907_p2)
}
  0x2e   : > { %793 = dma.hbm_to_vmem [thread:$0]  (!%p1081_p9), %s159_s23, 128, %s162_s25, %s148_s26  }
  0x2f   : > { %170 = sbr.rel (%p1099_p6) target bundleno = 380 (0x17c), region = 28  ;;  %s172_s22 = sand.u32 (!%p1099_p6), 1, %s977_s10  }
  0x30   : > { %s757_s4 = sshll.u32 (!%p1099_p6), %s172_s22, 5  ;;  %s173_s5 = scalar_lea.sflag (!%p1099_p6), [#allocation5], %s172_s22 }
  0x31   : > { %s176_s6 = scalar_lea.vmem (!%p1099_p6), [#allocation4], %s757_s4 }
  0x34   : > { %960 = dma.done.wait (%p1063_p7), %s173_s5, 512  }
  0x35   : > { %962 = vsyncadd (%p1063_p7), %s173_s5, 4294966784  ;;  %s758_s7 = sshll.u32 %s172_s22, 3  ;;  %s182_s9 = scalar_lea.sflag [#allocation8], %s172_s22 }
  0x36   : > { %s1121_s17 = scalar_lea.vmem [#allocation7], %s758_s7 }
  0x37   : > { %964 = dma.done.wait (%p1063_p7), %s182_s9, 128  }
  0x38   : > { %966 = vsyncadd (%p1063_p7), %s182_s9, 4294967168  ;;  %p208_p9 = scmp.eq.s32.totalorder %s985_s12, 0 }
  0x39   : > { %v997_v0 = vmov (%p208_p9), 0.0  }
  0x3a   : > { %213 = sbr.rel (!%p208_p9) target bundleno = 63 (0x3f), region = 40  ;;  %214 = vst [vmem:[#allocation2] sm:$0xff] (%p208_p9), %v997_v0 }
  0x3f PF: > { %v1128_v1 = vld [vmem:[%s176_s6] sm:$0xff]  ;;  %v1130_v2 = vld [vmem:[%s176_s6 + $0x8] sm:$0xff]  ;;  %v1132_v3 = vld [vmem:[%s176_s6 + $0x10] sm:$0xff]  ;;  %vm233_vm0 = vcmask 1043456   ;;  %v290_v4 = vlaneseq  ;;  %p574_p7 = scmp.eq.s32.totalorder %s985_s12, 1 }
  0x40   : > { %v1134_v5 = vld [vmem:[%s176_s6 + $0x18] sm:$0xff]  ;;  %v225_v6 = vcombine.high %v1128_v1, %v1128_v1  ;;  %v226_v7 = vcombine.high %v1130_v2, %v1130_v2  ;;  %v227_v8 = vcombine.high %v1132_v3, %v1132_v3  ;;  %v234_v9 = vsel %vm233_vm0, %v1128_v1, -inf }
  0x41   : > { %v228_v10 = vcombine.high %v1134_v5, %v1134_v5  ;;  %v235_v11 = vrot.slane %v234_v9, 4  ;;  %v248_v12 = vsel %vm233_vm0, %v1130_v2, -inf  ;;  %v262_v13 = vsel %vm233_vm0, %v1132_v3, -inf }
  0x42   : > { %v241_v14 = vsel %vm233_vm0, %v225_v6, -inf  ;;  %v249_v15 = vrot.slane %v248_v12, 4  ;;  %v255_v16 = vsel %vm233_vm0, %v226_v7, -inf  ;;  %v263_v17 = vrot.slane %v262_v13, 4 }
  0x43   : > { %v236_v18 = vmax.f32 %v234_v9, %v235_v11  ;;  %v242_v19 = vrot.slane %v241_v14, 4  ;;  %v256_v20 = vrot.slane %v255_v16, 4  ;;  %v269_v21 = vsel %vm233_vm0, %v227_v8, -inf }
  0x44   : > { %v250_v22 = vmax.f32 %v248_v12, %v249_v15  ;;  %v264_v23 = vmax.f32 %v262_v13, %v263_v17  ;;  %v270_v24 = vrot.slane %v269_v21, 4  ;;  %v276_v25 = vsel %vm233_vm0, %v1134_v5, -inf }
  0x45   : > { %v237_v26 = vrot.slane %v236_v18, 2  ;;  %v243_v27 = vmax.f32 %v241_v14, %v242_v19  ;;  %v257_v28 = vmax.f32 %v255_v16, %v256_v20  ;;  %v277_v29 = vrot.slane %v276_v25, 4 }
  0x46   : > { %v251_v30 = vrot.slane %v250_v22, 2  ;;  %v265_v31 = vrot.slane %v264_v23, 2  ;;  %v271_v32 = vmax.f32 %v269_v21, %v270_v24  ;;  %v283_v33 = vsel %vm233_vm0, %v228_v10, -inf }
  0x47   : > { %v238_v34 = vmax.f32 %v236_v18, %v237_v26  ;;  %v244_v35 = vrot.slane %v243_v27, 2  ;;  %v258_v36 = vrot.slane %v257_v28, 2  ;;  %v278_v37 = vmax.f32 %v276_v25, %v277_v29 }
  0x48   : > { %v252_v38 = vmax.f32 %v250_v22, %v251_v30  ;;  %v266_v39 = vmax.f32 %v264_v23, %v265_v31  ;;  %v272_v40 = vrot.slane %v271_v32, 2  ;;  %v284_v41 = vrot.slane %v283_v33, 4 }
  0x49   : > { %v239_v42 = vrot.slane %v238_v34, 1  ;;  %v245_v43 = vmax.f32 %v243_v27, %v244_v35  ;;  %v259_v44 = vmax.f32 %v257_v28, %v258_v36  ;;  %v279_v45 = vrot.slane %v278_v37, 2 }
  0x4a   : > { %v253_v46 = vrot.slane %v252_v38, 1  ;;  %v267_v47 = vrot.slane %v266_v39, 1  ;;  %v273_v48 = vmax.f32 %v271_v32, %v272_v40  ;;  %v285_v49 = vmax.f32 %v283_v33, %v284_v41 }
  0x4b   : > { %v240_v50 = vmax.f32 %v238_v34, %v239_v42  ;;  %v246_v51 = vrot.slane %v245_v43, 1  ;;  %v260_v52 = vrot.slane %v259_v44, 1  ;;  %v280_v53 = vmax.f32 %v278_v37, %v279_v45 }
  0x4c   : > { %v254_v54 = vmax.f32 %v252_v38, %v253_v46  ;;  %v268_v55 = vmax.f32 %v266_v39, %v267_v47  ;;  %v274_v56 = vrot.slane %v273_v48, 1  ;;  %v286_v57 = vrot.slane %v285_v49, 2 }
  0x4d   : > { %v247_v58 = vmax.f32 %v245_v43, %v246_v51  ;;  %v261_v59 = vmax.f32 %v259_v44, %v260_v52  ;;  %v281_v60 = vrot.slane %v280_v53, 1  ;;  %v1157_v61 = vshrl.u32 %v290_v4, 7  ;;  %v1169_v4 = vld [vmem:[%s1121_s17] sm:$0xff] }
  0x4e   : > { %v275_v62 = vmax.f32 %v273_v48, %v274_v56  ;;  %v287_v63 = vmax.f32 %v285_v49, %v286_v57  ;;  %v998_v0 = vmov 839922192   ;;  %vm447_vm15 = vcmp.ge.s32.totalorder %v1169_v4, 1 }
  0x4f   : > { %v313_v6 = vunpack.c.l.s4 %v998_v0  ;;  %v282_v7 = vmax.f32 %v280_v53, %v281_v60  ;;  %v300_v8 = vcombine.low %v240_v50, %v247_v58  ;;  %v301_v9 = vcombine.low %v254_v54, %v261_v59 }
  0x50   : > { %v1160_v10 = vsub.s32 0, %v1157_v61  ;;  %v288_v11 = vrot.slane %v287_v63, 1  ;;  %v302_v12 = vcombine.low %v268_v55, %v275_v62  ;;  %v1163_v14 = vsub.s32 1, %v1157_v61 }
  0x51   : > { %v314_v13 = vunpack.c.0.s8 %v313_v6  ;;  %v1166_v15 = vsub.s32 2, %v1157_v61  ;;  %vm308_vm1 = vcmp.eq.f32.partialorder %v1128_v1, %v300_v8  ;;  %vm309_vm2 = vcmp.eq.f32.partialorder %v1130_v2, %v301_v9 }
  0x52   : > { %v289_v16 = vmax.f32 %v287_v63, %v288_v11  ;;  %vm310_vm3 = vcmp.eq.f32.partialorder %v1132_v3, %v302_v12  ;;  %v410_v18 = vrot.slane %v1169_v4, %v1160_v10  ;;  %v414_v19 = vrot.slane %v1169_v4, %v1163_v14 }
  0x53   : > { %v317_v17 = vsub.s32 %v314_v13, %v1157_v61  ;;  %v418_v22 = vrot.slane %v1169_v4, %v1166_v15  ;;  %v1183_v1 = vsub.s32 3, %v1157_v61  ;;  %v1186_v23 = vsub.s32 4, %v1157_v61 }
  0x54   : > { %v303_v20 = vcombine.low %v282_v7, %v289_v16  ;;  %v1189_v2 = vsub.s32 5, %v1157_v61  ;;  %v1192_v3 = vsub.s32 6, %v1157_v61  ;;  %v1195_v24 = vsub.s32 7, %v1157_v61 }
  0x55   : > { %v318_v21 = vrot.slane %v1157_v61, %v317_v17  ;;  %v422_v9 = vrot.slane %v1169_v4, %v1183_v1  ;;  %v426_v11 = vrot.slane %v1169_v4, %v1186_v23 }
  0x56   : > { %vm311_vm4 = vcmp.eq.f32.partialorder %v1134_v5, %v303_v20  ;;  %v430_v12 = vrot.slane %v1169_v4, %v1189_v2 }
  0x57   : > { %v319_v25 = vsel %vm308_vm1, %v318_v21, 4  ;;  %v320_v26 = vsel %vm309_vm2, %v318_v21, 4  ;;  %v321_v27 = vsel %vm310_vm3, %v318_v21, 4  ;;  %v322_v28 = vsel %vm311_vm4, %v318_v21, 4 }
  0x58   : > { %v323_v29 = vcombine.high %v319_v25, %v319_v25  ;;  %v324_v30 = vcombine.high %v320_v26, %v320_v26  ;;  %v325_v31 = vcombine.high %v321_v27, %v321_v27  ;;  %v326_v32 = vcombine.high %v322_v28, %v322_v28 }
  0x59   : > { %v327_v33 = vsel %vm233_vm0, %v319_v25, 2147483647  ;;  %v347_v34 = vsel %vm233_vm0, %v320_v26, 2147483647  ;;  %v367_v35 = vsel %vm233_vm0, %v321_v27, 2147483647 }
  0x5a   : > { %v328_v36 = vrot.slane %v327_v33, 4  ;;  %v337_v37 = vsel %vm233_vm0, %v323_v29, 2147483647  ;;  %v348_v38 = vrot.slane %v347_v34, 4  ;;  %v357_v5 = vsel %vm233_vm0, %v324_v30, 2147483647 }
  0x5b   : > { %v338_v39 = vrot.slane %v337_v37, 4  ;;  %v358_v40 = vrot.slane %v357_v5, 4  ;;  %v368_v41 = vrot.slane %v367_v35, 4  ;;  %v377_v42 = vsel %vm233_vm0, %v325_v31, 2147483647 }
  0x5c   : > { %vm329_vm5 = vcmp.lt.s32.totalorder %v327_v33, %v328_v36  ;;  %vm349_vm6 = vcmp.lt.s32.totalorder %v347_v34, %v348_v38  ;;  %v378_v43 = vrot.slane %v377_v42, 4  ;;  %v387_v44 = vsel %vm233_vm0, %v322_v28, 2147483647 }
  0x5d   : > { %v330_v45 = vsel %vm329_vm5, %v327_v33, %v328_v36  ;;  %vm339_vm7 = vcmp.lt.s32.totalorder %v337_v37, %v338_v39  ;;  %v350_v46 = vsel %vm349_vm6, %v347_v34, %v348_v38  ;;  %vm359_vm8 = vcmp.lt.s32.totalorder %v357_v5, %v358_v40  ;;  %v513_v38 = vld [vmem:[#allocation2] sm:$0xff] }
  0x5e   : > { %v331_v47 = vrot.slane %v330_v45, 2  ;;  %v340_v48 = vsel %vm339_vm7, %v337_v37, %v338_v39  ;;  %v351_v49 = vrot.slane %v350_v46, 2  ;;  %v360_v50 = vsel %vm359_vm8, %v357_v5, %v358_v40 }
  0x5f   : > { %v341_v51 = vrot.slane %v340_v48, 2  ;;  %v361_v52 = vrot.slane %v360_v50, 2  ;;  %vm369_vm9 = vcmp.lt.s32.totalorder %v367_v35, %v368_v41  ;;  %vm379_vm10 = vcmp.lt.s32.totalorder %v377_v42, %v378_v43 }
  0x60   : > { %vm332_vm11 = vcmp.lt.s32.totalorder %v330_v45, %v331_v47  ;;  %vm352_vm12 = vcmp.lt.s32.totalorder %v350_v46, %v351_v49  ;;  %v370_v53 = vsel %vm369_vm9, %v367_v35, %v368_v41  ;;  %v380_v54 = vsel %vm379_vm10, %v377_v42, %v378_v43 }
  0x61   : > { %v333_v55 = vsel %vm332_vm11, %v330_v45, %v331_v47  ;;  %vm342_vm13 = vcmp.lt.s32.totalorder %v340_v48, %v341_v51  ;;  %v353_v56 = vsel %vm352_vm12, %v350_v46, %v351_v49  ;;  %vm362_vm14 = vcmp.lt.s32.totalorder %v360_v50, %v361_v52 }
  0x62   : > { %v334_v57 = vrot.slane %v333_v55, 1  ;;  %v343_v58 = vsel %vm342_vm13, %v340_v48, %v341_v51  ;;  %v354_v59 = vrot.slane %v353_v56, 1  ;;  %v363_v60 = vsel %vm362_vm14, %v360_v50, %v361_v52 }
  0x63   : > { %v344_v62 = vrot.slane %v343_v58, 1  ;;  %v364_v63 = vrot.slane %v363_v60, 1  ;;  %v371_v0 = vrot.slane %v370_v53, 2  ;;  %v381_v6 = vrot.slane %v380_v54, 2 }
  0x64   : > { %v388_v7 = vrot.slane %v387_v44, 4  ;;  %v397_v8 = vsel %vm233_vm0, %v326_v32, 2147483647  ;;  %vm335_vm1 = vcmp.lt.s32.totalorder %v333_v55, %v334_v57  ;;  %vm355_vm2 = vcmp.lt.s32.totalorder %v353_v56, %v354_v59 }
  0x65   : > { %vm345_vm3 = vcmp.lt.s32.totalorder %v343_v58, %v344_v62  ;;  %vm365_vm4 = vcmp.lt.s32.totalorder %v363_v60, %v364_v63  ;;  %vm372_vm5 = vcmp.lt.s32.totalorder %v370_v53, %v371_v0  ;;  %vm382_vm6 = vcmp.lt.s32.totalorder %v380_v54, %v381_v6 }
  0x66   : > { %v373_v13 = vsel %vm372_vm5, %v370_v53, %v371_v0  ;;  %v383_v16 = vsel %vm382_vm6, %v380_v54, %v381_v6  ;;  %vm389_vm7 = vcmp.lt.s32.totalorder %v387_v44, %v388_v7  ;;  %v398_v17 = vrot.slane %v397_v8, 4 }
  0x67   : > { %v336_v20 = vsel %vm335_vm1, %v333_v55, %v334_v57  ;;  %v374_v21 = vrot.slane %v373_v13, 1  ;;  %v384_v25 = vrot.slane %v383_v16, 1  ;;  %v390_v26 = vsel %vm389_vm7, %v387_v44, %v388_v7 }
  0x68   : > { %v346_v27 = vsel %vm345_vm3, %v343_v58, %v344_v62  ;;  %v356_v28 = vsel %vm355_vm2, %v353_v56, %v354_v59  ;;  %v391_v29 = vrot.slane %v390_v26, 2  ;;  %vm399_vm0 = vcmp.lt.s32.totalorder %v397_v8, %v398_v17 }
  0x69   : > { %v366_v30 = vsel %vm365_vm4, %v363_v60, %v364_v63  ;;  %vm375_vm8 = vcmp.lt.s32.totalorder %v373_v13, %v374_v21  ;;  %vm385_vm9 = vcmp.lt.s32.totalorder %v383_v16, %v384_v25  ;;  %v400_v31 = vsel %vm399_vm0, %v397_v8, %v398_v17 }
  0x6a   : > { %vm392_vm10 = vcmp.lt.s32.totalorder %v390_v26, %v391_v29  ;;  %v401_v32 = vrot.slane %v400_v31, 2  ;;  %v434_v33 = vrot.slane %v1169_v4, %v1192_v3  ;;  %v438_v34 = vrot.slane %v1169_v4, %v1195_v24 }
  0x6b   : > { %v376_v35 = vsel %vm375_vm8, %v373_v13, %v374_v21  ;;  %v393_v36 = vsel %vm392_vm10, %v390_v26, %v391_v29  ;;  %vm1220_vm11 = vcmp.eq.s32.totalorder %v336_v20, %v410_v18  ;;  %vm1227_vm12 = vcmp.eq.s32.totalorder %v346_v27, %v414_v19 }
  0x6c   : > { %v386_v5 = vsel %vm385_vm9, %v383_v16, %v384_v25  ;;  %v394_v39 = vrot.slane %v393_v36, 1  ;;  %vm402_vm13 = vcmp.lt.s32.totalorder %v400_v31, %v401_v32  ;;  %v999_v40 = vmov 0  }
  0x6d   : > { %v448_v41 = vsel %vm447_vm15, 1, %v999_v40  ;;  %v403_v42 = vsel %vm402_vm13, %v400_v31, %v401_v32  ;;  %vm1241_vm1 = vcmp.eq.s32.totalorder %v356_v28, %v418_v22  ;;  %vm1247_vm2 = vcmp.eq.s32.totalorder %v366_v30, %v422_v9 }
  0x6e   : > { %v452_v18 = vrot.slane %v448_v41, %v1160_v10  ;;  %v456_v43 = vrot.slane %v448_v41, %v1163_v14  ;;  %v460_v44 = vrot.slane %v448_v41, %v1166_v15  ;;  %vm395_vm14 = vcmp.lt.s32.totalorder %v393_v36, %v394_v39 }
  0x6f   : > { %v404_v45 = vrot.slane %v403_v42, 1  ;;  %v464_v19 = vrot.slane %v448_v41, %v1183_v1  ;;  %v468_v46 = vrot.slane %v448_v41, %v1186_v23  ;;  %v396_v47 = vsel %vm395_vm14, %v393_v36, %v394_v39 }
  0x70   : > { %v472_v49 = vrot.slane %v448_v41, %v1189_v2  ;;  %v476_v50 = vrot.slane %v448_v41, %v1192_v3  ;;  %vm1251_vm3 = vcmp.ne.s32.totalorder %v452_v18, 0  ;;  %vm1255_vm4 = vcmp.ne.s32.totalorder %v456_v43, 0 }
  0x71   : > { %vm405_vm15 = vcmp.lt.s32.totalorder %v403_v42, %v404_v45  ;;  %vm1259_vm5 = vcmp.eq.s32.totalorder %v376_v35, %v426_v11  ;;  %v480_v22 = vrot.slane %v448_v41, %v1195_v24  ;;  %vm1264_vm6 = vcmp.ne.s32.totalorder %v460_v44, 0  ;;  %vm489_vm0 = vmand %vm1220_vm11, %vm1251_vm3 }
  0x72   : > { %vm1268_vm7 = vcmp.ne.s32.totalorder %v464_v19, 0  ;;  %v406_v56 = vsel %vm405_vm15, %v403_v42, %v404_v45  ;;  %vm1276_vm8 = vcmp.eq.s32.totalorder %v386_v5, %v430_v12  ;;  %vm1280_vm9 = vcmp.eq.s32.totalorder %v396_v47, %v434_v33  ;;  %vm490_vm13 = vmand %vm1227_vm12, %vm1255_vm4 }
  0x73   : > { %vm1284_vm10 = vcmp.ne.s32.totalorder %v468_v46, 0  ;;  %vm1292_vm14 = vcmp.ne.s32.totalorder %v472_v49, 0  ;;  %vm1296_vm11 = vcmp.ne.s32.totalorder %v476_v50, 0  ;;  %vm491_vm15 = vmand %vm1241_vm1, %vm1264_vm6  ;;  %v1000_v63 = vmov 0.0  }
  0x74   : > { %vm492_vm3 = vmand %vm1247_vm2, %vm1268_vm7  ;;  %v760_v0 = vsel %vm489_vm0, 1.0, %v1000_v63  ;;  %v761_v6 = vsel %vm490_vm13, 1.0, %v1000_v63  ;;  %v762_v7 = vsel %vm491_vm15, 1.0, %v1000_v63  ;;  %v1001_v8 = vmov 1966171168  }
  0x75   : > { %v527_v9 = vunpack.c.l.s4 %v1001_v8  ;;  %vm1308_vm12 = vcmp.eq.s32.totalorder %v406_v56, %v438_v34  ;;  %vm488_vm4 = vcmp.ne.s32.totalorder %v480_v22, 0  ;;  %vm493_vm1 = vmand %vm1259_vm5, %vm1284_vm10  ;;  %v763_v12 = vsel %vm492_vm3, 1.0, %v1000_v63 }
  0x76   : > { %vm494_vm2 = vmand %vm1276_vm8, %vm1292_vm14  ;;  %v764_v13 = vsel %vm493_vm1, 1.0, %v1000_v63  ;;  %v522_v16 = vcombine.low %v760_v0, %v761_v6  ;;  %v523_v17 = vcombine.low %v762_v7, %v763_v12  ;;  %vm621_vm5 = vcmask (%p574_p7), 1040384  }
  0x77   : > { %v528_v20 = vunpack.c.0.s8 %v527_v9  ;;  %vm495_vm6 = vmand %vm1280_vm9, %vm1296_vm11  ;;  %v765_v21 = vsel %vm494_vm2, 1.0, %v1000_v63  ;;  %vm650_vm0 = vcmask (%p574_p7), 0  }
  0x78   : > { %vm496_vm7 = vmand %vm1308_vm12, %vm488_vm4  ;;  %v766_v25 = vsel %vm495_vm6, 1.0, %v1000_v63  ;;  %v524_v26 = vcombine.low %v764_v13, %v765_v21 }
  0x79   : > { %v531_v27 = vsub.s32 %v528_v20, %v1157_v61  ;;  %v767_v28 = vsel %vm496_vm7, 1.0, %v1000_v63 }
  0x7a   : > { %v525_v29 = vcombine.low %v766_v25, %v767_v28 }
  0x7b   : > { %v532_v30 = vrot.slane %v522_v16, %v531_v27  ;;  %v539_v31 = vrot.slane %v523_v17, %v531_v27  ;;  %v546_v32 = vrot.slane %v524_v26, %v531_v27 }
  0x7c   : > { %v553_v33 = vrot.slane %v525_v29, %v531_v27 }
  0x7d   : > { %v554_v34 = vcombine.low %v532_v30, %v539_v31 }
  0x7e   : > { %v555_v35 = vcombine.low %v546_v32, %v553_v33 }
  0x7f   : > { %v562_v36 = vrot.slane %v554_v34, %v531_v27 }
  0x80   : > { %v569_v37 = vrot.slane %v555_v35, %v531_v27 }
  0x82   : > { %v570_v5 = vcombine.low %v562_v36, %v569_v37  ;;  %578 = sbr.rel (!%p574_p7) target bundleno = 365 (0x16d), region = 44 }
  0x84   : > { %v572_v39 = vadd.f32 %v570_v5, %v513_v38 }
  0x86   : > { %573 = vst [vmem:[#allocation2] sm:$0xff] %v572_v39 }
  0x8d   : > { %v579_v40 = vld [vmem:[#allocation2] sm:$0xff] }
  0x8e   : > { %v584_v61 = vrot.slane %v579_v40, %v1160_v10  ;;  %v588_v41 = vrot.slane %v579_v40, %v1163_v14  ;;  %v592_v42 = vrot.slane %v579_v40, %v1166_v15  ;;  %v596_v18 = vrot.slane %v579_v40, %v1183_v1 }
  0x8f   : > { %v600_v43 = vrot.slane %v579_v40, %v1186_v23  ;;  %v604_v47 = vrot.slane %v579_v40, %v1189_v2  ;;  %v608_v14 = vrot.slane %v579_v40, %v1192_v3  ;;  %v612_v1 = vrot.slane %v579_v40, %v1195_v24 }
  0x90   : > { %v622_v44 = vsel %vm621_vm5, %v584_v61, 0.0  ;;  %v623_v45 = vsel %vm621_vm5, %v588_v41, 0.0  ;;  %v625_v19 = vsel %vm621_vm5, %v592_v42, 0.0  ;;  %v627_v48 = vsel %vm621_vm5, %v596_v18, 0.0 }
  0x91   : > { %v624_v46 = vadd.f32 %v623_v45, %v622_v44  ;;  %v629_v15 = vsel %vm621_vm5, %v600_v43, 0.0  ;;  %v631_v23 = vsel %vm621_vm5, %v604_v47, 0.0  ;;  %v633_v51 = vsel %vm621_vm5, %v608_v14, 0.0 }
  0x92   : > { %v635_v53 = vsel %vm621_vm5, %v612_v1, 0.0 }
  0x93   : > { %v626_v10 = vadd.f32 %v625_v19, %v624_v46 }
  0x95   : > { %v628_v49 = vadd.f32 %v627_v48, %v626_v10 }
  0x97   : > { %v630_v50 = vadd.f32 %v629_v15, %v628_v49 }
  0x99   : > { %v632_v52 = vadd.f32 %v631_v23, %v630_v50 }
  0x9b   : > { %v634_v4 = vadd.f32 %v633_v51, %v632_v52 }
  0x9d   : > { %v636_v2 = vadd.f32 %v635_v53, %v634_v4 }
  0x9f   : > { %637 = vadd.xlane.f32.xlu0 %v636_v2 }
 0x128   : > { %v638_v22 = vpop.xlane.xlu0 %637 }
 0x129   : > { %v639_v54 = vrot.slane %v638_v22, 4 }
 0x12b   : > { %v640_v55 = vadd.f32 %v639_v54, %v638_v22 }
 0x12d   : > { %v641_v3 = vrot.slane %v640_v55, 2 }
 0x12f   : > { %v642_v56 = vadd.f32 %v641_v3, %v640_v55 }
 0x131   : > { %v643_v57 = vrot.slane %v642_v56, 1 }
 0x133   : > { %v644_v58 = vadd.f32 %v643_v57, %v642_v56 }
 0x135   : > { %777 = vpush %v644_v58 }
 0x166   : > { %s778_s12 = spop %777 }
 0x167   : > { %v646_v24 = vstv %s778_s12 }
 0x168   : > { %v648_v59 = vmul.f32 0.00048828125, %v646_v24 }
 0x16a   : > { %v649_v60 = vsub.f32 1.0, %v648_v59 }
 0x16c   : > { %651 = vst.msk [vmem:[#allocation9] sm:$0x1] %vm650_vm0, %v649_v60 }
 0x16d PF: > { %p1347_p12 = scmp.eq.s32.totalorder %s747_s15, 1  ;;  %s1002_s30 = smov [#allocation9]  }
 0x16e   : > { %s659_s8 = sshll.u32 %s1002_s30, 4  ;;  %s660_s8 = int_to_ptr.vmem [resolvable:$true] %s659_s8 }
 0x16f   : > { %s911_s18 = scalar_lea.vmem %s660_s8, 16  ;;  %s917_s19 = scalar_lea.vmem %s660_s8, 32 }
 0x170   : > { %p912_p3 = scmp.ne.s32.totalorder %s660_s8, %s911_s18  ;;  %p918_p6 = scmp.lt.s32.totalorder %s660_s8, %s660_s8 }
 0x171   : > { %p919_p8 = scmp.lt.s32.totalorder %s917_s19, %s911_s18 }
 0x172   : > { %p913_p4 = pnand %p912_p3, %p1347_p12 }
 0x173   : > { %p920_p13 = por %p919_p8, %p918_p6 }
 0x174   : > { %p914_p5 = pneg %p913_p4 }
 0x176   : > { %p921_p0 = pnand %p920_p13, %p914_p5 }
 0x178   : > { %924 = shalt.err (!%p921_p0)
}
 0x179   : > { %784 = dma.vmem_to_hbm [thread:$0]  (%p1347_p12), %s660_s8, 16, %s1382_s2, [#allocation6]  }
 0x17a   : > { %968 = dma.done.wait (%p1347_p12), [#allocation6], 16  }
 0x17b   : > { %970 = vsyncadd (%p1347_p12), [#allocation6], 4294967280 }
 0x17c PF: > { %s19_s14 = sadd.s32 1, %s993_s14   ;;  %s1418_s9 = smov %s977_s10 }
 0x17d   : > { %p16_p10 = scmp.ge.s32.totalorder %s19_s14, 4   ;;  %s1419_s10 = smov %s981_s11 }
 0x17e   : > { %s1420_s11 = smov %s1069_s21  ;;  %s1421_s12 = smov %s989_s13 }
 0x17f   : > { %s1422_s13 = smov %s1424_s16  ;;  %18 = sbr.rel (!%p16_p10) target bundleno = 7 (0x7), region = 86 }
 0x184   :  { %672 = vsyncpa [#allocation5], 1 }
 0x185   :  { %674 = vsyncpa [#allocation5 + $0x1], 1 }
 0x186   :  { %675 = vsyncpa [#allocation8], 1 }
 0x187   :  { %677 = vsyncpa [#allocation8 + $0x1], 1 }
 0x188   :  { %678 = vsyncpa [#allocation6], 1 }
 0x189   :  { %680 = vsyncpa [#allocation6 + $0x1], 1 }

</bundles_post_ra>
